<compile_context>
chip_gen: v7x
topology: tpu7x:2x2x1
jax: 0.10.0
libtpu: 0.0.40
codegen_flags: <defaults>
</compile_context>

<pallas_src>
import functools

import jax
import jax.numpy as jnp
from jax.experimental import pallas as pl
from jax.experimental.pallas import tpu as pltpu


def _class_embedder_kernel(ids_ref, table_hbm, out_hbm, sems, *, rows_per_step, batch):
    """Gather `rows_per_step` embedding rows per grid step, straight HBM -> HBM.

    ids_ref:   (B,) int32 class labels in SMEM (scalar-prefetched).
    table_hbm: (n_classes, D) embedding table, left in HBM (pl.ANY).
    out_hbm:   (B, D) output, left in HBM (pl.ANY); rows written only via DMA.
    sems:      (rows_per_step,) DMA semaphores, one per in-flight gather.
    """
    base = pl.program_id(0) * rows_per_step
    tail_mask_needed = (batch % rows_per_step) != 0

    def row_copy(r):
        idx = base + r
        row = ids_ref[idx]
        return pltpu.make_async_copy(
            table_hbm.at[pl.ds(row, 1), :],   # (1, D) selected row, in HBM
            out_hbm.at[pl.ds(idx, 1), :],     # (1, D) destination row, in HBM
            sems.at[r],
        )

    def guarded(r, fn):
        # Only emit the scf.if tail guard when B is not a multiple of R.
        if tail_mask_needed:
            pl.when(base + r < batch)(fn)
        else:
            fn()

    # Issue every gather of this step before waiting on any of them: keeps
    # rows_per_step DMAs in flight so only ~one HBM round-trip is exposed.
    for r in range(rows_per_step):
        guarded(r, lambda r=r: row_copy(r).start())
    for r in range(rows_per_step):
        guarded(r, lambda r=r: row_copy(r).wait())


def class_embedder_forward(batch, emb_table, *, key="class", rows_per_step=16):
    """ClassEmbedder.forward(batch, key): returns (B, 1, embed_dim)."""
    # TODO(synk): dict-key selection (batch[key]) and the [:, None] unsqueeze are
    # Python / shape glue with no in-kernel equivalent; handled here in the wrapper.
    class_ids = jnp.asarray(batch[key]).astype(jnp.int32)       # (B,)
    B = class_ids.shape[0]
    n_classes, D = emb_table.shape
    # nn.Embedding raises on out-of-range ids; clamp so a bad id can never drive
    # the gather DMA outside the table.
    class_ids = jnp.clip(class_ids, 0, n_classes - 1)

    R = max(1, min(rows_per_step, B))
    kernel = functools.partial(_class_embedder_kernel, rows_per_step=R, batch=B)

    out_2d = pl.pallas_call(
        kernel,
        grid_spec=pltpu.PrefetchScalarGridSpec(
            num_scalar_prefetch=1,                          # class ids -> SMEM
            grid=(pl.cdiv(B, R),),
            in_specs=[pl.BlockSpec(memory_space=pl.ANY)],   # table stays in HBM
            out_specs=pl.BlockSpec(memory_space=pl.ANY),    # output stays in HBM
            scratch_shapes=[pltpu.SemaphoreType.DMA((R,))],
        ),
        out_shape=jax.ShapeDtypeStruct((B, D), emb_table.dtype),
        compiler_params=pltpu.CompilerParams(
            # v7x 2-TC sharding only pays off when each core gets enough rows.
            dimension_semantics=("parallel",) if B >= 64 else ("arbitrary",),
        ),
    )(class_ids, emb_table)

    return out_2d[:, None, :]                               # (B, 1, embed_dim)


if __name__ == "__main__":
    # ClassEmbedder defaults: n_classes=1000; small, lane-aligned embed_dim.
    n_classes, embed_dim, B = 1000, 512, 4

    root = jax.random.PRNGKey(0)
    k_table, k_ids = jax.random.split(root)
    emb_table = jax.random.normal(k_table, (n_classes, embed_dim), jnp.float32)
    labels = jax.random.randint(k_ids, (B,), 0, n_classes, dtype=jnp.int32)
    batch = {"class": labels}

    c = class_embedder_forward(batch, emb_table, key="class")
    c = jax.block_until_ready(c)

    assert c.shape == (B, 1, embed_dim), c.shape
    ref = emb_table[labels][:, None, :]     # pure-JAX reference (nn.Embedding gather)
    assert jnp.array_equal(c, ref), float(jnp.max(jnp.abs(c - ref)))
    assert bool(jnp.all(jnp.isfinite(c)))
    print("KERNEL_OK")
</pallas_src>

<mosaic_0001>
module attributes {stable_mosaic.version = 11 : i64} {
  func.func @_class_embedder_kernel(%arg0: i32, %arg1: memref<4xi32, #tpu.memory_space<smem>>, %arg2: memref<1000x512xf32, #tpu.memory_space<any>>, %arg3: memref<4x512xf32, #tpu.memory_space<any>>, %arg4: memref<4x!tpu.dma_semaphore, #tpu.memory_space<semaphore_mem>>) attributes {dimension_semantics = [#tpu.dimension_semantics<arbitrary>], iteration_bounds = array<i64: 1>, scalar_prefetch = 1 : i64, scratch_operands = 1 : i64, tpu.core_type = #tpu.core_type<tc>, window_params = [{}, {}]} {
    %c4_i32 = arith.constant 4 : i32
    %0 = arith.muli %arg0, %c4_i32 : i32
    %c0_i32 = arith.constant 0 : i32
    %1 = arith.addi %0, %c0_i32 : i32
    %2 = arith.index_cast %1 : i32 to index
    %3 = memref.load %arg1[%2] : memref<4xi32, #tpu.memory_space<smem>>
    %c0_i32_0 = arith.constant 0 : i32
    %c0_i32_1 = arith.constant 0 : i32
    %4 = tpu.memref_slice %arg2[%3, %c0_i32_1] : memref<1000x512xf32, #tpu.memory_space<any>> -> memref<1x512xf32, #tpu.memory_space<any>>
    %c0_i32_2 = arith.constant 0 : i32
    %5 = tpu.memref_slice %arg3[%1, %c0_i32_2] : memref<4x512xf32, #tpu.memory_space<any>> -> memref<1x512xf32, #tpu.memory_space<any>>
    %6 = tpu.memref_slice %arg4[%c0_i32_0] : memref<4x!tpu.dma_semaphore, #tpu.memory_space<semaphore_mem>> -> memref<1x!tpu.dma_semaphore, #tpu.memory_space<semaphore_mem>>
    %7 = tpu.memref_squeeze %6 : memref<1x!tpu.dma_semaphore, #tpu.memory_space<semaphore_mem>> -> memref<!tpu.dma_semaphore, #tpu.memory_space<semaphore_mem>>
    tpu.enqueue_dma source(%4 : memref<1x512xf32, #tpu.memory_space<any>>) target(%5 : memref<1x512xf32, #tpu.memory_space<any>>) target_semaphore(%7 : memref<!tpu.dma_semaphore, #tpu.memory_space<semaphore_mem>>)
    %c1_i32 = arith.constant 1 : i32
    %8 = arith.addi %0, %c1_i32 : i32
    %9 = arith.index_cast %8 : i32 to index
    %10 = memref.load %arg1[%9] : memref<4xi32, #tpu.memory_space<smem>>
    %c1_i32_3 = arith.constant 1 : i32
    %c0_i32_4 = arith.constant 0 : i32
    %11 = tpu.memref_slice %arg2[%10, %c0_i32_4] : memref<1000x512xf32, #tpu.memory_space<any>> -> memref<1x512xf32, #tpu.memory_space<any>>
    %c0_i32_5 = arith.constant 0 : i32
    %12 = tpu.memref_slice %arg3[%8, %c0_i32_5] : memref<4x512xf32, #tpu.memory_space<any>> -> memref<1x512xf32, #tpu.memory_space<any>>
    %13 = tpu.memref_slice %arg4[%c1_i32_3] : memref<4x!tpu.dma_semaphore, #tpu.memory_space<semaphore_mem>> -> memref<1x!tpu.dma_semaphore, #tpu.memory_space<semaphore_mem>>
    %14 = tpu.memref_squeeze %13 : memref<1x!tpu.dma_semaphore, #tpu.memory_space<semaphore_mem>> -> memref<!tpu.dma_semaphore, #tpu.memory_space<semaphore_mem>>
    tpu.enqueue_dma source(%11 : memref<1x512xf32, #tpu.memory_space<any>>) target(%12 : memref<1x512xf32, #tpu.memory_space<any>>) target_semaphore(%14 : memref<!tpu.dma_semaphore, #tpu.memory_space<semaphore_mem>>)
    %c2_i32 = arith.constant 2 : i32
    %15 = arith.addi %0, %c2_i32 : i32
    %16 = arith.index_cast %15 : i32 to index
    %17 = memref.load %arg1[%16] : memref<4xi32, #tpu.memory_space<smem>>
    %c2_i32_6 = arith.constant 2 : i32
    %c0_i32_7 = arith.constant 0 : i32
    %18 = tpu.memref_slice %arg2[%17, %c0_i32_7] : memref<1000x512xf32, #tpu.memory_space<any>> -> memref<1x512xf32, #tpu.memory_space<any>>
    %c0_i32_8 = arith.constant 0 : i32
    %19 = tpu.memref_slice %arg3[%15, %c0_i32_8] : memref<4x512xf32, #tpu.memory_space<any>> -> memref<1x512xf32, #tpu.memory_space<any>>
    %20 = tpu.memref_slice %arg4[%c2_i32_6] : memref<4x!tpu.dma_semaphore, #tpu.memory_space<semaphore_mem>> -> memref<1x!tpu.dma_semaphore, #tpu.memory_space<semaphore_mem>>
    %21 = tpu.memref_squeeze %20 : memref<1x!tpu.dma_semaphore, #tpu.memory_space<semaphore_mem>> -> memref<!tpu.dma_semaphore, #tpu.memory_space<semaphore_mem>>
    tpu.enqueue_dma source(%18 : memref<1x512xf32, #tpu.memory_space<any>>) target(%19 : memref<1x512xf32, #tpu.memory_space<any>>) target_semaphore(%21 : memref<!tpu.dma_semaphore, #tpu.memory_space<semaphore_mem>>)
    %c3_i32 = arith.constant 3 : i32
    %22 = arith.addi %0, %c3_i32 : i32
    %23 = arith.index_cast %22 : i32 to index
    %24 = memref.load %arg1[%23] : memref<4xi32, #tpu.memory_space<smem>>
    %c3_i32_9 = arith.constant 3 : i32
    %c0_i32_10 = arith.constant 0 : i32
    %25 = tpu.memref_slice %arg2[%24, %c0_i32_10] : memref<1000x512xf32, #tpu.memory_space<any>> -> memref<1x512xf32, #tpu.memory_space<any>>
    %c0_i32_11 = arith.constant 0 : i32
    %26 = tpu.memref_slice %arg3[%22, %c0_i32_11] : memref<4x512xf32, #tpu.memory_space<any>> -> memref<1x512xf32, #tpu.memory_space<any>>
    %27 = tpu.memref_slice %arg4[%c3_i32_9] : memref<4x!tpu.dma_semaphore, #tpu.memory_space<semaphore_mem>> -> memref<1x!tpu.dma_semaphore, #tpu.memory_space<semaphore_mem>>
    %28 = tpu.memref_squeeze %27 : memref<1x!tpu.dma_semaphore, #tpu.memory_space<semaphore_mem>> -> memref<!tpu.dma_semaphore, #tpu.memory_space<semaphore_mem>>
    tpu.enqueue_dma source(%25 : memref<1x512xf32, #tpu.memory_space<any>>) target(%26 : memref<1x512xf32, #tpu.memory_space<any>>) target_semaphore(%28 : memref<!tpu.dma_semaphore, #tpu.memory_space<semaphore_mem>>)
    %c0_i32_12 = arith.constant 0 : i32
    %29 = arith.addi %0, %c0_i32_12 : i32
    %30 = arith.index_cast %29 : i32 to index
    %31 = memref.load %arg1[%30] : memref<4xi32, #tpu.memory_space<smem>>
    %c0_i32_13 = arith.constant 0 : i32
    %c0_i32_14 = arith.constant 0 : i32
    %32 = tpu.memref_slice %arg2[%31, %c0_i32_14] : memref<1000x512xf32, #tpu.memory_space<any>> -> memref<1x512xf32, #tpu.memory_space<any>>
    %c0_i32_15 = arith.constant 0 : i32
    %33 = tpu.memref_slice %arg3[%29, %c0_i32_15] : memref<4x512xf32, #tpu.memory_space<any>> -> memref<1x512xf32, #tpu.memory_space<any>>
    %34 = tpu.memref_slice %arg4[%c0_i32_13] : memref<4x!tpu.dma_semaphore, #tpu.memory_space<semaphore_mem>> -> memref<1x!tpu.dma_semaphore, #tpu.memory_space<semaphore_mem>>
    %35 = tpu.memref_squeeze %34 : memref<1x!tpu.dma_semaphore, #tpu.memory_space<semaphore_mem>> -> memref<!tpu.dma_semaphore, #tpu.memory_space<semaphore_mem>>
    tpu.wait_dma2 semaphore(%35 : memref<!tpu.dma_semaphore, #tpu.memory_space<semaphore_mem>>) src(%32 : memref<1x512xf32, #tpu.memory_space<any>>) dst(%33 : memref<1x512xf32, #tpu.memory_space<any>>)
    %c1_i32_16 = arith.constant 1 : i32
    %36 = arith.addi %0, %c1_i32_16 : i32
    %37 = arith.index_cast %36 : i32 to index
    %38 = memref.load %arg1[%37] : memref<4xi32, #tpu.memory_space<smem>>
    %c1_i32_17 = arith.constant 1 : i32
    %c0_i32_18 = arith.constant 0 : i32
    %39 = tpu.memref_slice %arg2[%38, %c0_i32_18] : memref<1000x512xf32, #tpu.memory_space<any>> -> memref<1x512xf32, #tpu.memory_space<any>>
    %c0_i32_19 = arith.constant 0 : i32
    %40 = tpu.memref_slice %arg3[%36, %c0_i32_19] : memref<4x512xf32, #tpu.memory_space<any>> -> memref<1x512xf32, #tpu.memory_space<any>>
    %41 = tpu.memref_slice %arg4[%c1_i32_17] : memref<4x!tpu.dma_semaphore, #tpu.memory_space<semaphore_mem>> -> memref<1x!tpu.dma_semaphore, #tpu.memory_space<semaphore_mem>>
    %42 = tpu.memref_squeeze %41 : memref<1x!tpu.dma_semaphore, #tpu.memory_space<semaphore_mem>> -> memref<!tpu.dma_semaphore, #tpu.memory_space<semaphore_mem>>
    tpu.wait_dma2 semaphore(%42 : memref<!tpu.dma_semaphore, #tpu.memory_space<semaphore_mem>>) src(%39 : memref<1x512xf32, #tpu.memory_space<any>>) dst(%40 : memref<1x512xf32, #tpu.memory_space<any>>)
    %c2_i32_20 = arith.constant 2 : i32
    %43 = arith.addi %0, %c2_i32_20 : i32
    %44 = arith.index_cast %43 : i32 to index
    %45 = memref.load %arg1[%44] : memref<4xi32, #tpu.memory_space<smem>>
    %c2_i32_21 = arith.constant 2 : i32
    %c0_i32_22 = arith.constant 0 : i32
    %46 = tpu.memref_slice %arg2[%45, %c0_i32_22] : memref<1000x512xf32, #tpu.memory_space<any>> -> memref<1x512xf32, #tpu.memory_space<any>>
    %c0_i32_23 = arith.constant 0 : i32
    %47 = tpu.memref_slice %arg3[%43, %c0_i32_23] : memref<4x512xf32, #tpu.memory_space<any>> -> memref<1x512xf32, #tpu.memory_space<any>>
    %48 = tpu.memref_slice %arg4[%c2_i32_21] : memref<4x!tpu.dma_semaphore, #tpu.memory_space<semaphore_mem>> -> memref<1x!tpu.dma_semaphore, #tpu.memory_space<semaphore_mem>>
    %49 = tpu.memref_squeeze %48 : memref<1x!tpu.dma_semaphore, #tpu.memory_space<semaphore_mem>> -> memref<!tpu.dma_semaphore, #tpu.memory_space<semaphore_mem>>
    tpu.wait_dma2 semaphore(%49 : memref<!tpu.dma_semaphore, #tpu.memory_space<semaphore_mem>>) src(%46 : memref<1x512xf32, #tpu.memory_space<any>>) dst(%47 : memref<1x512xf32, #tpu.memory_space<any>>)
    %c3_i32_24 = arith.constant 3 : i32
    %50 = arith.addi %0, %c3_i32_24 : i32
    %51 = arith.index_cast %50 : i32 to index
    %52 = memref.load %arg1[%51] : memref<4xi32, #tpu.memory_space<smem>>
    %c3_i32_25 = arith.constant 3 : i32
    %c0_i32_26 = arith.constant 0 : i32
    %53 = tpu.memref_slice %arg2[%52, %c0_i32_26] : memref<1000x512xf32, #tpu.memory_space<any>> -> memref<1x512xf32, #tpu.memory_space<any>>
    %c0_i32_27 = arith.constant 0 : i32
    %54 = tpu.memref_slice %arg3[%50, %c0_i32_27] : memref<4x512xf32, #tpu.memory_space<any>> -> memref<1x512xf32, #tpu.memory_space<any>>
    %55 = tpu.memref_slice %arg4[%c3_i32_25] : memref<4x!tpu.dma_semaphore, #tpu.memory_space<semaphore_mem>> -> memref<1x!tpu.dma_semaphore, #tpu.memory_space<semaphore_mem>>
    %56 = tpu.memref_squeeze %55 : memref<1x!tpu.dma_semaphore, #tpu.memory_space<semaphore_mem>> -> memref<!tpu.dma_semaphore, #tpu.memory_space<semaphore_mem>>
    tpu.wait_dma2 semaphore(%56 : memref<!tpu.dma_semaphore, #tpu.memory_space<semaphore_mem>>) src(%53 : memref<1x512xf32, #tpu.memory_space<any>>) dst(%54 : memref<1x512xf32, #tpu.memory_space<any>>)
    return
  }
}

</mosaic_0001>

<bundles_post_ra>
// kernel: tpu_custom_call.1
= control target key start
LH: loop header
LB: loop body
LE: loop exit
PB: predicated region body
PF: predicated region fallthrough
CT: control target
= control target key end

     0   :  { %s346_s0 = inlined_call_operand.hbm [shape: s32[4], index: 0, kind: input, shape index: {}]   ;;  %s347_s1 = inlined_call_operand.hbm [shape: f32[1000,512], index: 1, kind: input, shape index: {}]   ;;  %s348_s2 = inlined_call_operand.hbm [shape: f32[4,512], index: 2, kind: output, shape index: {}]  }
   0x1   :  { %s246_s11 = scalar_lea.hbm %s346_s0, 16 }
   0x2   :  { %p247_p0 = scmp.ne.s32.totalorder %s346_s0, %s246_s11  ;;  %p250_p1 = scmp.lt.u32.totalorder %s246_s11, %s346_s0 }
   0x4   :  { %p252_p2 = pnand %p250_p1, %p247_p0 }
   0x6   :  { %255 = shalt.err (!%p252_p2)  }
   0x7   :  { %s266_s16 = smov [#allocation4]  }
   0x8   :  { %8 = dma.hbm_to_smem %s346_s0, 16, %s266_s16, [#allocation3] }
   0x9   :  { %256 = dma.done.wait [#allocation3], 16 }
   0xa   :  { %257 = vsyncadd [#allocation3], 4294967280 }
   0xb   :  { %10 = sfence }
   0xc   :  { %s12_s19 = sld [smem:[#allocation4]]  ;;  %s267_s20 = smov 128  }
   0xd   :  { %37 = sst [smem:[#allocation6]] %s267_s20  ;;  %s268_s21 = smov 64  }
   0xe   :  { %39 = sst [smem:[#allocation6 + $0x1]] %s268_s21  ;;  %s269_s22 = smov 1  }
   0xf   :  { %41 = sst [smem:[#allocation6 + $0x2]] %s269_s22  ;;  %s270_s30 = smov [#allocation2]  }
  0x10   :  { %s271_s3 = smov [#allocation5]   ;;  %s272_s4 = smov 0  }
  0x11   :  { %s57_s10 = scalar_lea.hbm %s348_s2, 16  ;;  %s275_s8 = smov [#allocation2 + $0x2]  }
  0x12   :  { %s13_s23 = sshrl.u32 %s12_s19, 3  ;;  %s14_s24 = sand.u32 7, %s12_s19  }
  0x13   :  { %s218_s25 = sshll.u32 %s13_s23, 5  ;;  %s273_s19 = smov [#allocation2 + $0x1]  }
  0x14   :  { %s16_s26 = sadd.s32 %s218_s25, %s14_s24  ;;  %s274_s23 = smov [#allocation7]  }
  0x15   :  { %s219_s27 = sshll.u32 %s16_s26, 4  ;;  %s276_s9 = smov [#allocation9]  }
  0x16   :  { %s18_s29 = scalar_lea.hbm %s347_s1, %s219_s27  ;;  %s91_s27 = scalar_lea.hbm %s348_s2, 32 }
  0x17   :  { %43 = dma.general %s18_s29, 64, %s348_s2, %s270_s30, %s271_s3, [#allocation6], %s272_s4, 0  }
  0x18   :  { %s220_s7 = sld [smem:[#allocation4 + $0x1]]  ;;  %71 = sst [smem:[#allocation8]] %s267_s20 }
  0x19   :  { %73 = sst [smem:[#allocation8 + $0x1]] %s268_s21  ;;  %s277_s25 = smov [#allocation2 + $0x3]  }
  0x1a   :  { %75 = sst [smem:[#allocation8 + $0x2]] %s269_s22  ;;  %s278_s26 = smov [#allocation11]  }
  0x1e   :  { %s46_s11 = sshrl.u32 %s220_s7, 3  ;;  %s47_s12 = sand.u32 7, %s220_s7  }
  0x1f   :  { %s221_s13 = sshll.u32 %s46_s11, 5 }
  0x20   :  { %s49_s14 = sadd.s32 %s221_s13, %s47_s12  ;;  %s125_s13 = scalar_lea.hbm %s348_s2, 48 }
  0x21   :  { %s222_s15 = sshll.u32 %s49_s14, 4 }
  0x22   :  { %s51_s18 = scalar_lea.hbm %s347_s1, %s222_s15 }
  0x23   :  { %77 = dma.general %s51_s18, 64, %s57_s10, %s273_s19, %s274_s23, [#allocation8], %s272_s4, 0  }
  0x24   :  { %s223_s24 = sld [smem:[#allocation4 + $0x2]]  ;;  %105 = sst [smem:[#allocation10]] %s267_s20 }
  0x25   :  { %107 = sst [smem:[#allocation10 + $0x1]] %s268_s21 }
  0x26   :  { %109 = sst [smem:[#allocation10 + $0x2]] %s269_s22 }
  0x2a   :  { %s80_s28 = sshrl.u32 %s223_s24, 3  ;;  %s81_s0 = sand.u32 7, %s223_s24  }
  0x2b   :  { %s224_s29 = sshll.u32 %s80_s28, 5 }
  0x2c   :  { %s83_s30 = sadd.s32 %s224_s29, %s81_s0 }
  0x2d   :  { %s225_s3 = sshll.u32 %s83_s30, 4 }
  0x2e   :  { %s85_s7 = scalar_lea.hbm %s347_s1, %s225_s3 }
  0x2f   :  { %111 = dma.general %s85_s7, 64, %s91_s27, %s275_s8, %s276_s9, [#allocation10], %s272_s4, 0  }
  0x30   :  { %s226_s10 = sld [smem:[#allocation4 + $0x3]]  ;;  %139 = sst [smem:[#allocation12]] %s267_s20 }
  0x31   :  { %141 = sst [smem:[#allocation12 + $0x1]] %s268_s21 }
  0x32   :  { %143 = sst [smem:[#allocation12 + $0x2]] %s269_s22 }
  0x36   :  { %s114_s14 = sshrl.u32 %s226_s10, 3  ;;  %s115_s15 = sand.u32 7, %s226_s10  }
  0x37   :  { %s227_s16 = sshll.u32 %s114_s14, 5 }
  0x38   :  { %s117_s17 = sadd.s32 %s227_s16, %s115_s15 }
  0x39   :  { %s228_s18 = sshll.u32 %s117_s17, 4 }
  0x3a   :  { %s119_s24 = scalar_lea.hbm %s347_s1, %s228_s18 }
  0x3b   :  { %145 = dma.general %s119_s24, 64, %s125_s13, %s277_s25, %s278_s26, [#allocation12], %s272_s4, 0  }
  0x3c   :  { %258 = dma.done.wait [#allocation2], 64 }
  0x3d   :  { %259 = vsyncadd [#allocation2], 4294967232 }
  0x3e   :  { %260 = dma.done.wait [#allocation2 + $0x1], 64 }
  0x3f   :  { %261 = vsyncadd [#allocation2 + $0x1], 4294967232 }
  0x40   :  { %262 = dma.done.wait [#allocation2 + $0x2], 64 }
  0x41   :  { %263 = vsyncadd [#allocation2 + $0x2], 4294967232 }
  0x42   :  { %264 = dma.done.wait [#allocation2 + $0x3], 64 }
  0x43   :  { %265 = vsyncadd [#allocation2 + $0x3], 4294967232 }
  0x44   :  { %159 = vsyncmov [#allocation2] }
  0x47   :  { %s160_s2 = vpop.sfrf %159 }
  0x48   :  { %p229_p3 = scmp.ne.s32.totalorder %s160_s2, 0 }
  0x4a   :  { %164 = shalt.err (%p229_p3)  }
  0x4b   :  { %166 = vsyncmov [#allocation2 + $0x1] }
  0x4e   :  { %s167_s20 = vpop.sfrf %166 }
  0x4f   :  { %p230_p4 = scmp.ne.s32.totalorder %s167_s20, 0 }
  0x51   :  { %171 = shalt.err (%p230_p4)  }
  0x52   :  { %173 = vsyncmov [#allocation2 + $0x2] }
  0x55   :  { %s174_s1 = vpop.sfrf %173 }
  0x56   :  { %p231_p5 = scmp.ne.s32.totalorder %s174_s1, 0 }
  0x58   :  { %178 = shalt.err (%p231_p5)  }
  0x59   :  { %180 = vsyncmov [#allocation2 + $0x3] }
  0x5c   :  { %s181_s21 = vpop.sfrf %180 }
  0x5d   :  { %p232_p6 = scmp.ne.s32.totalorder %s181_s21, 0 }
  0x5f   :  { %185 = shalt.err (%p232_p6)  }

</bundles_post_ra>
